<compile_context>
chip_gen: v5e
topology: v5e:2x2
jax: 0.10.0
libtpu: 0.0.40
codegen_flags: <defaults>
</compile_context>

<pallas_src>
import jax
import jax.numpy as jnp
from jax.experimental import pallas as pl
from jax.experimental.pallas import tpu as pltpu  # noqa: F401  (TPU backend)

_OUT_ROWS = 5
_OUT_COLS = 6
_BYTES = _OUT_ROWS * _OUT_COLS * 4  # 120 B in + 120 B out


def _identity_copy_kernel(a_ref, o_ref):
    # Whole-tile copy: one load, one store.  The actual "view" is metadata-only
    # and is handled (for free) by the wrapper's reshape.
    o_ref[...] = a_ref[...]


def view_no_change_2d(a):
    """Pallas equivalent of `a.view(5, 6)` for a 2D float32 input (30 elems)."""
    assert a.ndim == 2 and a.size == _OUT_ROWS * _OUT_COLS, (
        "ViewNoChange2dModule expects a 2D tensor with 30 elements")

    # Canonicalize: row-major flatten/reshape to (5, 6) in plain JAX.  This
    # matches torch .view() semantics for contiguous tensors and guarantees a
    # single kernel shape regardless of the incoming (R, C).
    a_canon = a.reshape(_OUT_ROWS, _OUT_COLS)

    out = pl.pallas_call(
        _identity_copy_kernel,
        out_shape=jax.ShapeDtypeStruct((_OUT_ROWS, _OUT_COLS), a.dtype),
        # Whole-array block (block shape == full array dims) -> satisfies the
        # (8,128) rule; the data is a single padded vreg, so no grid/tiling.
        in_specs=[pl.BlockSpec((_OUT_ROWS, _OUT_COLS), lambda: (0, 0))],
        out_specs=pl.BlockSpec((_OUT_ROWS, _OUT_COLS), lambda: (0, 0)),
        # Advisory hint: this custom call is trivial; don't schedule around it
        # as if it were expensive.
        cost_estimate=pl.CostEstimate(
            flops=0, transcendentals=0, bytes_accessed=2 * _BYTES),
    )(a_canon)
    return out


if __name__ == "__main__":
    key = jax.random.PRNGKey(0)

    # Canonical test shape for ViewNoChange2dModule: (5, 6) float32.
    a = jax.random.normal(key, (5, 6), dtype=jnp.float32)
    out = jax.block_until_ready(view_no_change_2d(a))
    ref = a.reshape(5, 6)
    assert out.shape == (5, 6)
    assert out.dtype == jnp.float32
    assert bool(jnp.all(out == ref))

    # Dynamic-shape contract ([-1, -1]): a different 2D layout with 30 elems
    # still maps onto the same compiled kernel via the wrapper canonicalization.
    b = jax.random.normal(jax.random.PRNGKey(1), (3, 10), dtype=jnp.float32)
    out_b = jax.block_until_ready(view_no_change_2d(b))
    ref_b = b.reshape(5, 6)
    assert out_b.shape == (5, 6)
    assert bool(jnp.all(out_b == ref_b))

    print("KERNEL_OK")
</pallas_src>

<mosaic_0001>
module attributes {stable_mosaic.version = 11 : i64} {
  func.func @_identity_copy_kernel(%arg0: memref<5x6xf32, #tpu.memory_space<vmem>>, %arg1: memref<5x6xf32, #tpu.memory_space<vmem>>) attributes {dimension_semantics = [], scalar_prefetch = 0 : i64, scratch_operands = 0 : i64, tpu.core_type = #tpu.core_type<tc>} {
    %c0 = arith.constant 0 : index
    %c0_0 = arith.constant 0 : index
    %0 = vector.load %arg0[%c0, %c0_0] : memref<5x6xf32, #tpu.memory_space<vmem>>, vector<5x6xf32>
    %c0_1 = arith.constant 0 : index
    %c0_2 = arith.constant 0 : index
    %1 = vector.load %arg1[%c0_1, %c0_2] : memref<5x6xf32, #tpu.memory_space<vmem>>, vector<5x6xf32>
    tpu.vector_store %arg1[%c0_1, %c0_2], %0 {strides = array<i32>} : memref<5x6xf32, #tpu.memory_space<vmem>>, vector<5x6xf32>,
    return
  }
}

</mosaic_0001>

<bundles_post_ra>
// kernel: tpu_custom_call.1
= control target key start
LH: loop header
LB: loop body
LE: loop exit
PB: predicated region body
PF: predicated region fallthrough
CT: control target
= control target key end

     0   :  { %6 = vsyncpa [#allocation3], 0  ;;  %s115_s0 = inlined_call_operand.hbm [shape: f32[5,6], index: 0, kind: input, shape index: {}]   ;;  %s116_s1 = inlined_call_operand.hbm [shape: f32[5,6], index: 1, kind: output, shape index: {}]  }
   0x1   :  { %7 = vsyncpa [#allocation4], 0  ;;  %s13_s8 = sshll.u32 %s115_s0, 4  ;;  %s97_s9 = smov [#allocation2]   ;;  %s14_s8 = int_to_ptr.hbm [resolvable:$true] %s13_s8 }
   0x2   :  { %s15_s10 = sshll.u32 %s97_s9, 4  ;;  %s16_s10 = int_to_ptr.vmem [resolvable:$true] %s15_s10 }
   0x3   :  { %18 = dma.hbm_to_vmem [thread:$0]  %s14_s8, 128, %s16_s10, [#allocation3]  }
   0x4   :  { %93 = dma.done.wait [#allocation3], 128  }
   0x5   :  { %94 = vsyncadd [#allocation3], 4294967168  ;;  %s98_s11 = smov [#allocation5]   ;;  %s33_s15 = sshll.u32 %s116_s1, 4  ;;  %vm24_vm0 = vcmask 45056   ;;  %s34_s15 = int_to_ptr.hbm [resolvable:$true] %s33_s15 }
   0x6   :  { %s31_s12 = sshll.u32 %s98_s11, 4  ;;  %v23_v0 = vld [vmem:[#allocation2] sm:$0x1f]  ;;  %s32_s12 = int_to_ptr.vmem [resolvable:$true] %s31_s12 }
   0x7   :  { %25 = vst.msk [vmem:[#allocation5] sm:$0x1f] %vm24_vm0, %v23_v0 }
   0x8   :  { %36 = dma.vmem_to_hbm [thread:$0]  %s32_s12, 128, %s34_s15, [#allocation4]  }
   0x9   :  { %95 = dma.done.wait [#allocation4], 128  }
   0xa   :  { %96 = vsyncadd [#allocation4], 4294967168 }
   0xb   :  { %41 = vsyncpa [#allocation3], 1 }
   0xc   :  { %42 = vsyncpa [#allocation4], 1 }

</bundles_post_ra>
